<compile_context>
chip_gen: v7x
topology: tpu7x:2x2x1
jax: 0.10.0
libtpu: 0.0.40
codegen_flags: <defaults>
</compile_context>

<pallas_src>
import jax
import jax.numpy as jnp
from jax.experimental import pallas as pl
from jax.experimental.pallas import tpu as pltpu


_MAX_LANE_WIDTH = 1024                    # cap on folded lane width (param vreg pressure)
_PIPELINE_MIN_BYTES = 4 * 1024 * 1024     # above this, insist on a multi-step grid


def _affine_kernel(alpha_ref, beta_ref, x_ref, o_ref):
    # alpha_ref / beta_ref: (1, L) resident rows; x_ref / o_ref: (tm, L) tile.
    # Sublane-broadcast mul + add on the VPU; single lane-dense store.
    o_ref[...] = x_ref[...] * alpha_ref[...] + beta_ref[...]


def _divisors(n):
    ds = []
    i = 1
    while i * i <= n:
        if n % i == 0:
            ds.append(i)
            if i != n // i:
                ds.append(n // i)
        i += 1
    return sorted(ds)


def _choose_layout(B, S, F):
    """Flatten (B, S, F) -> (rows, L) with L = fold * F and fold | (B*S).

    Preference for L: multiple of 128 (no masked stores / vreg padding),
    then >= 128 lanes, then as wide as possible up to _MAX_LANE_WIDTH.
    Since F | L, alpha/beta tile cleanly into a single (1, L) row.
    """
    n3d = B * S
    best_fold = 1
    best_key = ((F % 128) == 0, F >= 128, F if F <= _MAX_LANE_WIDTH else 0)
    for d in _divisors(n3d):
        L = d * F
        if d == 1 or L > _MAX_LANE_WIDTH:
            continue
        key = ((L % 128) == 0, L >= 128, L)
        if key > best_key:
            best_fold, best_key = d, key
    # TODO(synk): when no divisor of B*S yields a 128-multiple lane width, a
    # periodic (P, L) param block with index_map (i % P, 0) would remove the
    # remaining masked lane chunk; current fallback just maximizes L >= 128.
    L = best_fold * F
    return (n3d * F) // L, L, best_fold


def _vmem_budgets():
    """(per-buffer tile budget, vmem_limit cap), gated on VMEM capacity."""
    vmem_cap = 64 * 1024 * 1024                      # conservative default: v7x (64 MiB / TC)
    try:
        vmem_cap = int(pltpu.get_tpu_info().vmem_capacity_bytes)
    except Exception:
        pass
    if vmem_cap >= 96 * 1024 * 1024:                 # v5e / v6e: 128 MiB VMEM
        return 20 * 1024 * 1024, 96 * 1024 * 1024
    return 10 * 1024 * 1024, 52 * 1024 * 1024        # v7x: stay well under 64 MiB / TC


def _choose_tm(rows, row_bytes, sublane, tile_budget):
    """Row-tile height: big tiles, but never a degenerate 1-step grid on real data."""
    tm_cap = max(1, tile_budget // row_bytes)
    if tm_cap >= rows:
        tm_cap = rows
    else:
        tm_cap = max(sublane, (tm_cap // sublane) * sublane)

    total_bytes = rows * row_bytes
    if total_bytes <= _PIPELINE_MIN_BYTES or rows <= sublane:
        return min(tm_cap, rows)

    # >= 4 grid steps (DMA-in(i+1)/compute(i)/DMA-out(i-1) overlap) and an even
    # count (balanced dual-TensorCore sharding on v7x via the "parallel" axis).
    steps = max(4, pl.cdiv(rows, tm_cap))
    steps = 2 * pl.cdiv(steps, 2)
    tm = pl.cdiv(rows, steps)
    tm = pl.cdiv(tm, sublane) * sublane      # dtype-aware sublane alignment
    return max(1, min(tm, tm_cap, rows))


def affine_transform(x, alpha, beta):
    """alpha * x + beta with per-feature broadcast.  x: (B, S, F); alpha/beta: (1, 1, F)."""
    B, S, F = x.shape
    assert alpha.shape == (1, 1, F) and beta.shape == (1, 1, F)

    itemsize = jnp.dtype(x.dtype).itemsize
    sublane = max(1, (8 * 4) // itemsize)    # 8 (f32), 16 (bf16), 32 (int8/fp8)

    rows, L, fold = _choose_layout(B, S, F)

    # Layout plumbing (x is row-major contiguous, so these reshapes are bitcasts).
    # NOTE: params are cast to x.dtype — the affine runs entirely in x's precision.
    x2d = x.reshape(rows, L)
    alpha_row = jnp.tile(alpha.reshape(-1).astype(x.dtype), fold).reshape(1, L)
    beta_row = jnp.tile(beta.reshape(-1).astype(x.dtype), fold).reshape(1, L)

    tile_budget, vmem_cap_limit = _vmem_budgets()
    row_bytes = L * itemsize
    tm = _choose_tm(rows, row_bytes, sublane, tile_budget)
    grid = (pl.cdiv(rows, tm),)

    tile_bytes = tm * row_bytes
    param_bytes = 2 * row_bytes
    vmem_limit = int(min(vmem_cap_limit,
                         max(16 * 1024 * 1024,
                             4 * tile_bytes + 4 * param_bytes + 4 * 1024 * 1024)))

    total = rows * L
    cost = pl.CostEstimate(flops=2 * total,
                           transcendentals=0,
                           bytes_accessed=2 * total * itemsize + 2 * L * itemsize)

    out2d = pl.pallas_call(
        _affine_kernel,
        out_shape=jax.ShapeDtypeStruct((rows, L), x.dtype),
        grid_spec=pltpu.PrefetchScalarGridSpec(
            num_scalar_prefetch=0,
            grid=grid,
            in_specs=[
                # params: constant block index -> resident, not re-DMA'd per step
                pl.BlockSpec((1, L), lambda i: (0, 0)),
                pl.BlockSpec((1, L), lambda i: (0, 0)),
                # streaming row-tile of x
                pl.BlockSpec((tm, L), lambda i: (i, 0)),
            ],
            out_specs=pl.BlockSpec((tm, L), lambda i: (i, 0)),
        ),
        # x2d (arg 2) aliases the output: same-index tiles only, so it is safe;
        # callers that donate x (jit donate_argnums) avoid the output allocation.
        input_output_aliases={2: 0},
        compiler_params=pltpu.CompilerParams(
            dimension_semantics=("parallel",),
            vmem_limit_bytes=vmem_limit,
        ),
        cost_estimate=cost,
    )(alpha_row, beta_row, x2d)

    return out2d.reshape(B, S, F)


if __name__ == "__main__":
    B, S, F = 2, 8, 32  # batch, seq, num_features

    key = jax.random.PRNGKey(0)
    kx, ka, kb = jax.random.split(key, 3)

    x = jax.random.normal(kx, (B, S, F), dtype=jnp.float32)

    # Deterministic "trained" parameters (module init is ones/zeros; perturb so
    # the check is non-trivial but reproducible).
    alpha = jnp.ones((1, 1, F), dtype=jnp.float32) + 0.1 * jax.random.normal(
        ka, (1, 1, F), dtype=jnp.float32
    )
    beta = jnp.zeros((1, 1, F), dtype=jnp.float32) + 0.1 * jax.random.normal(
        kb, (1, 1, F), dtype=jnp.float32
    )

    # Reference (PyTorch forward semantics) computed before the aliasing kernel call.
    ref = alpha * x + beta

    out = jax.block_until_ready(affine_transform(x, alpha, beta))

    assert out.shape == x.shape and out.dtype == x.dtype
    assert jnp.allclose(out, ref, atol=1e-6, rtol=1e-6)

    print("KERNEL_OK")
</pallas_src>

<mosaic_0001>
module attributes {stable_mosaic.version = 11 : i64} {
  func.func @_affine_kernel(%arg0: i32, %arg1: memref<1x512xf32, #tpu.memory_space<vmem>>, %arg2: memref<1x512xf32, #tpu.memory_space<vmem>>, %arg3: memref<1x512xf32, #tpu.memory_space<vmem>>, %arg4: memref<1x512xf32, #tpu.memory_space<vmem>>) attributes {dimension_semantics = [#tpu.dimension_semantics<parallel>], iteration_bounds = array<i64: 1>, scalar_prefetch = 0 : i64, scratch_operands = 0 : i64, tpu.core_type = #tpu.core_type<tc>, window_params = [{pipeline_mode = #tpu.pipeline_mode<synchronous>, transform_indices = @transform_0, window_bounds = array<i64: 1, 512>}, {pipeline_mode = #tpu.pipeline_mode<synchronous>, transform_indices = @transform_1, window_bounds = array<i64: 1, 512>}, {transform_indices = @transform_2, window_bounds = array<i64: 1, 512>}, {transform_indices = @transform_3, window_bounds = array<i64: 1, 512>}]} {
    %c0 = arith.constant 0 : index
    %c0_0 = arith.constant 0 : index
    %0 = vector.load %arg3[%c0, %c0_0] : memref<1x512xf32, #tpu.memory_space<vmem>>, vector<1x512xf32>
    %c0_1 = arith.constant 0 : index
    %c0_2 = arith.constant 0 : index
    %1 = vector.load %arg1[%c0_1, %c0_2] : memref<1x512xf32, #tpu.memory_space<vmem>>, vector<1x512xf32>
    %2 = arith.mulf %0, %1 : vector<1x512xf32>
    %c0_3 = arith.constant 0 : index
    %c0_4 = arith.constant 0 : index
    %3 = vector.load %arg2[%c0_3, %c0_4] : memref<1x512xf32, #tpu.memory_space<vmem>>, vector<1x512xf32>
    %4 = arith.addf %2, %3 : vector<1x512xf32>
    %c0_5 = arith.constant 0 : index
    %c0_6 = arith.constant 0 : index
    %5 = vector.load %arg4[%c0_5, %c0_6] : memref<1x512xf32, #tpu.memory_space<vmem>>, vector<1x512xf32>
    tpu.vector_store %arg4[%c0_5, %c0_6], %4 {strides = array<i32>} : memref<1x512xf32, #tpu.memory_space<vmem>>, vector<1x512xf32>,
    return
  }
  func.func @transform_0(%arg0: i32) -> (i32, i32) {
    %c0_i32 = arith.constant 0 : i32
    %c0_i32_0 = arith.constant 0 : i32
    %c0_i32_1 = arith.constant 0 : i32
    return %c0_i32, %c0_i32_0 : i32, i32
  }
  func.func @transform_1(%arg0: i32) -> (i32, i32) {
    %c0_i32 = arith.constant 0 : i32
    %c0_i32_0 = arith.constant 0 : i32
    %c0_i32_1 = arith.constant 0 : i32
    return %c0_i32, %c0_i32_0 : i32, i32
  }
  func.func @transform_2(%arg0: i32) -> (i32, i32) {
    %c0_i32 = arith.constant 0 : i32
    %c0_i32_0 = arith.constant 0 : i32
    return %arg0, %c0_i32 : i32, i32
  }
  func.func @transform_3(%arg0: i32) -> (i32, i32) {
    %c0_i32 = arith.constant 0 : i32
    %c0_i32_0 = arith.constant 0 : i32
    return %arg0, %c0_i32 : i32, i32
  }
}

</mosaic_0001>

<bundles_post_ra>
// kernel: tpu_custom_call.1
= control target key start
LH: loop header
LB: loop body
LE: loop exit
PB: predicated region body
PF: predicated region fallthrough
CT: control target
= control target key end

     0   :  { %8 = vsyncpa [#allocation3], 0  ;;  %s154_s0 = inlined_call_operand.vmem [shape: f32[1,512], index: 0, kind: input, shape index: {}]   ;;  %s155_s1 = inlined_call_operand.vmem [shape: f32[1,512], index: 1, kind: input, shape index: {}]   ;;  %s156_s2 = inlined_call_operand.hbm [shape: f32[1,512], index: 2, kind: input, shape index: {}, may-alias: {2,3}]   ;;  %s157_s3 = inlined_call_operand.hbm [shape: f32[1,512], index: 3, kind: output, shape index: {}, may-alias: {2,3}]  }
   0x1   :  { %9 = vsyncpa [#allocation4], 0  ;;  %s102_s12 = smov [#allocation2]   ;;  %s54_s16 = scalar_lea.hbm %s156_s2, 64 }
   0x2   :  { %s20_s13 = sshll.u32 %s102_s12, 4  ;;  %p55_p0 = scmp.ne.s32.totalorder %s156_s2, %s54_s16  ;;  %s21_s13 = int_to_ptr.vmem [resolvable:$true] %s20_s13 }
   0x3   :  { %p58_p1 = scmp.lt.u32.totalorder %s54_s16, %s156_s2 }
   0x5   :  { %p60_p2 = pnand %p58_p1, %p55_p0 }
   0x7   :  { %63 = shalt.err (!%p60_p2)
}
   0x8   :  { %s64_s21 = scalar_lea.vmem %s21_s13, 64  ;;  %p69_p4 = scmp.lt.s32.totalorder %s21_s13, %s21_s13 }
   0x9   :  { %p65_p3 = scmp.ne.s32.totalorder %s21_s13, %s64_s21  ;;  %p70_p5 = scmp.lt.s32.totalorder %s64_s21, %s64_s21 }
   0xb   :  { %p71_p6 = por %p70_p5, %p69_p4 }
   0xd   :  { %p72_p7 = pnand %p71_p6, %p65_p3 }
   0xf   :  { %75 = shalt.err (!%p72_p7)
}
  0x10   :  { %23 = dma.hbm_to_vmem [thread:$0]  %s156_s2, 64, %s21_s13, [#allocation3]  }
  0x11   :  { %98 = dma.done.wait [#allocation3], 64  }
  0x12   :  { %99 = vsyncadd [#allocation3], 4294967232  ;;  %v32_v0 = vlaneseq  ;;  %s103_s24 = smov [#allocation5]   ;;  %v27_v1 = vld [vmem:[#allocation2] sm:$0xf] }
  0x13   :  { %s43_s25 = sshll.u32 %s103_s24, 4  ;;  %v28_v2 = vld [vmem:[%s154_s0] sm:$0xf]  ;;  %s44_s25 = int_to_ptr.vmem [resolvable:$true] %s43_s25 }
  0x14   :  { %v30_v3 = vld [vmem:[%s155_s1] sm:$0xf]  ;;  %v29_v4 = vmul.f32 %v28_v2, %v27_v1  ;;  %vm34_vm0 = vcmp.lt.s32.totalorder %v32_v0, 512  ;;  %s76_s2 = scalar_lea.vmem %s44_s25, 64  ;;  %p81_p9 = scmp.lt.s32.totalorder %s44_s25, %s44_s25 }
  0x15   :  { %p77_p8 = scmp.ne.s32.totalorder %s44_s25, %s76_s2  ;;  %p82_p10 = scmp.lt.s32.totalorder %s76_s2, %s76_s2 }
  0x16   :  { %v31_v5 = vadd.f32 %v30_v3, %v29_v4 }
  0x17   :  { %p83_p11 = por %p82_p10, %p81_p9 }
  0x18   :  { %36 = vst.msk [vmem:[#allocation5] sm:$0xf] %vm34_vm0, %v31_v5 }
  0x19   :  { %p84_p12 = pnand %p83_p11, %p77_p8 }
  0x1b   :  { %87 = shalt.err (!%p84_p12)
}
  0x1c   :  { %s88_s0 = scalar_lea.hbm %s157_s3, 64 }
  0x1d   :  { %p89_p13 = scmp.ne.s32.totalorder %s157_s3, %s88_s0  ;;  %p92_p0 = scmp.lt.u32.totalorder %s88_s0, %s157_s3 }
  0x1f   :  { %p94_p1 = pnand %p92_p0, %p89_p13 }
  0x21   :  { %97 = shalt.err (!%p94_p1)
}
  0x22   :  { %46 = dma.vmem_to_hbm [thread:$0]  %s44_s25, 64, %s157_s3, [#allocation4]  }
  0x23   :  { %100 = dma.done.wait [#allocation4], 64  }
  0x24   :  { %101 = vsyncadd [#allocation4], 4294967232 }
  0x25   :  { %50 = vsyncpa [#allocation3], 1 }
  0x26   :  { %51 = vsyncpa [#allocation4], 1 }

</bundles_post_ra>
